<compile_context>
chip_gen: v7x
topology: tpu7x:2x2x1
jax: 0.10.0
libtpu: 0.0.40
codegen_flags: <defaults>
</compile_context>

<pallas_src>
import functools

import jax
import jax.numpy as jnp
import numpy as np
from jax.experimental import pallas as pl
from jax.experimental.pallas import tpu as pltpu


LANES = 128
# Lane positions of the per-call column vectors inside the packed param slab.
_COL_BIAS1 = 124   # rows [0, B*HID) : b1 + time/cond embedding, batch-stacked
_COL_SA = 125      # rows [0, B*C)   : sqrtab[t[b]]  repeated per channel
_COL_SB = 126      # rows [0, B*C)   : sqrtmab[t[b]] repeated per channel
_COL_B2 = 127      # rows [0, B*C)   : b2 tiled per batch


# ----------------------------------------------------------------------------
# DDPM schedules (exact port of the PyTorch helper)
# ----------------------------------------------------------------------------
def ddpm_schedules(beta1: float, beta2: float, T: int):
    assert beta1 < beta2 < 1.0, "beta1 and beta2 must be in (0, 1)"
    beta_t = (beta2 - beta1) * jnp.arange(0, T + 1, dtype=jnp.float32) / T + beta1
    sqrt_beta_t = jnp.sqrt(beta_t)
    alpha_t = 1.0 - beta_t
    log_alpha_t = jnp.log(alpha_t)
    alphabar_t = jnp.exp(jnp.cumsum(log_alpha_t, axis=0))
    sqrtab = jnp.sqrt(alphabar_t)
    oneover_sqrta = 1.0 / jnp.sqrt(alpha_t)
    sqrtmab = jnp.sqrt(1.0 - alphabar_t)
    mab_over_sqrtmab_inv = (1.0 - alpha_t) / sqrtmab
    return {
        "alpha_t": alpha_t,
        "oneover_sqrta": oneover_sqrta,
        "sqrt_beta_t": sqrt_beta_t,
        "alphabar_t": alphabar_t,
        "sqrtab": sqrtab,
        "sqrtmab": sqrtmab,
        "mab_over_sqrtmab": mab_over_sqrtmab_inv,
    }


# ----------------------------------------------------------------------------
# Pallas kernel: single invocation, whole batch in one (B*C, HW) block
# ----------------------------------------------------------------------------
def _ddpm_kernel(x_ref, eps_ref, slab_ref, loss_ref, *, B, C, HID):
    BC = B * C
    BH = B * HID
    HW = x_ref.shape[-1]
    lanes = loss_ref.shape[-1]

    x = x_ref[...]                                       # (BC, HW) lane-dense
    eps = eps_ref[...]                                   # (BC, HW)

    # per-(batch,channel) diffusion coefficients, static lane slices of slab
    sa = slab_ref[0:BC, _COL_SA:_COL_SA + 1]             # (BC, 1)
    sb = slab_ref[0:BC, _COL_SB:_COL_SB + 1]             # (BC, 1)
    x_t = sa * x + sb * eps                              # forward diffusion

    # eps_model layer 1 on the MXU: block-diag weight handles all batches in
    # one matmul (no per-channel VPU broadcast chain, no in-kernel transpose).
    w1bd = slab_ref[0:BH, 0:BC]                          # (BH, BC)
    bias1 = slab_ref[0:BH, _COL_BIAS1:_COL_BIAS1 + 1]    # (BH, 1) = b1 + emb
    h = jnp.dot(w1bd, x_t, preferred_element_type=jnp.float32) + bias1
    h = jnp.maximum(h, 0.0)                              # (BH, HW)

    # eps_model layer 2 on the MXU, one schedule for the whole batch
    w2bd = slab_ref[BH:BH + BC, 0:BH]                    # (BC, BH)
    b2 = slab_ref[0:BC, _COL_B2:_COL_B2 + 1]             # (BC, 1)
    pred = jnp.dot(w2bd, h, preferred_element_type=jnp.float32) + b2  # (BC, HW)

    # per-batch MSE over (C, H, W)
    sq = (eps - pred) ** 2                               # (BC, HW)
    sq3 = sq.reshape(B, C, HW)                           # split sublane dim only
    s = jnp.sum(sq3, axis=2, keepdims=True)              # (B, C, 1) lane reduce
    s = jnp.sum(s, axis=1, keepdims=True)                # (B, 1, 1)
    inv_denom = 1.0 / float(C * HW)
    # lane-dense unmasked store of the (broadcast) per-batch loss rows
    loss_ref[...] = jnp.broadcast_to(s * inv_denom, (B, 1, lanes))


# ----------------------------------------------------------------------------
# Wrapper
# ----------------------------------------------------------------------------
def ddpm_forward(x_nchw, t, cond, eps_nchw, params, sched):
    B, C, H, W = x_nchw.shape
    HW = H * W
    HID = params["w1"].shape[1]
    BC, BH = B * C, B * HID
    assert BH < _COL_BIAS1 and BC < _COL_BIAS1, "slab column layout collision"

    # Native NCHW; collapsing (H, W) -> HW is a free, layout-preserving reshape.
    x = x_nchw.reshape(BC, HW)
    eps = eps_nchw.reshape(BC, HW)

    # schedule gathers + embedding lookup (tiny glue)
    sa = sched["sqrtab"][t].astype(jnp.float32)                # (B,)
    sb = sched["sqrtmab"][t].astype(jnp.float32)               # (B,)
    emb = params["t_table"][t] + params["c_table"][cond]       # (B, HID)
    bias1 = (emb + params["b1"]).astype(jnp.float32).reshape(BH)

    # block-diagonal per-batch weights (one MXU matmul per layer for all B)
    eye_b = jnp.eye(B, dtype=jnp.float32)
    w1bd = jnp.kron(eye_b, params["w1"].T.astype(jnp.float32))  # (BH, BC)
    w2bd = jnp.kron(eye_b, params["w2"].T.astype(jnp.float32))  # (BC, BH)

    # Pack every small operand into ONE f32 slab -> a single extra VMEM stream.
    rows = BH + BC
    slab = jnp.zeros((rows, LANES), jnp.float32)
    slab = slab.at[0:BH, 0:BC].set(w1bd)
    slab = slab.at[BH:rows, 0:BH].set(w2bd)
    slab = slab.at[0:BH, _COL_BIAS1].set(bias1)
    slab = slab.at[0:BC, _COL_SA].set(jnp.repeat(sa, C))
    slab = slab.at[0:BC, _COL_SB].set(jnp.repeat(sb, C))
    slab = slab.at[0:BC, _COL_B2].set(jnp.tile(params["b2"].reshape(C).astype(jnp.float32), B))

    flops = 2 * BH * BC * HW + 2 * BC * BH * HW + 8 * BC * HW
    bytes_accessed = 4 * (2 * BC * HW + rows * LANES + B * LANES)
    cost = pl.CostEstimate(flops=flops, transcendentals=0,
                           bytes_accessed=bytes_accessed)

    out = pl.pallas_call(
        functools.partial(_ddpm_kernel, B=B, C=C, HID=HID),
        out_shape=jax.ShapeDtypeStruct((B, 1, LANES), jnp.float32),
        in_specs=[
            pl.BlockSpec(memory_space=pltpu.MemorySpace.VMEM),   # x   (BC, HW)
            pl.BlockSpec(memory_space=pltpu.MemorySpace.VMEM),   # eps (BC, HW)
            pl.BlockSpec(memory_space=pltpu.MemorySpace.VMEM),   # packed slab
        ],
        out_specs=pl.BlockSpec(memory_space=pltpu.MemorySpace.VMEM),
        cost_estimate=cost,
    )(x, eps, slab)

    batchwise_loss = out[:, 0, 0]                                # (B,)
    return batchwise_loss.mean(), {"batchwise_loss": batchwise_loss}


# pure-JAX reference (mirrors the PyTorch forward) for a correctness check
def ddpm_forward_ref(x_nchw, t, cond, eps_nchw, params, sched):
    B, C, H, W = x_nchw.shape
    sa = sched["sqrtab"][t][:, None, None, None]
    sb = sched["sqrtmab"][t][:, None, None, None]
    x_t = sa * x_nchw + sb * eps_nchw
    xt = jnp.transpose(x_t, (0, 2, 3, 1)).reshape(B, H * W, C)
    emb = params["t_table"][t] + params["c_table"][cond]
    h = jnp.maximum(xt @ params["w1"] + params["b1"] + emb[:, None, :], 0.0)
    pred = h @ params["w2"] + params["b2"]
    pred = jnp.transpose(pred.reshape(B, H, W, C), (0, 3, 1, 2))
    sqerr = (eps_nchw - pred) ** 2
    bw = sqerr.mean(axis=(1, 2, 3))
    return bw.mean(), bw


if __name__ == "__main__":
    B, C, H, W = 2, 4, 16, 16
    HID = 32
    n_T = 100
    n_classes = 4

    key = jax.random.PRNGKey(0)
    k_x, k_eps, k_t, k_w1, k_w2, k_tt, k_ct = jax.random.split(key, 7)

    # PyTorch-style NCHW input, integer timesteps in [1, n_T], class conditions
    x = jax.random.normal(k_x, (B, C, H, W), dtype=jnp.float32)
    eps = jax.random.normal(k_eps, (B, C, H, W), dtype=jnp.float32)
    t = jax.random.randint(k_t, (B,), 1, n_T + 1, dtype=jnp.int32)
    cond = jnp.arange(B, dtype=jnp.int32) % n_classes

    params = {
        "w1": 0.1 * jax.random.normal(k_w1, (C, HID), jnp.float32),
        "b1": jnp.zeros((1, HID), jnp.float32),
        "w2": 0.1 * jax.random.normal(k_w2, (HID, C), jnp.float32),
        "b2": jnp.zeros((1, C), jnp.float32),
        "t_table": 0.1 * jax.random.normal(k_tt, (n_T + 1, HID), jnp.float32),
        "c_table": 0.1 * jax.random.normal(k_ct, (n_classes + 1, HID), jnp.float32),
    }
    sched = ddpm_schedules(1e-4, 0.02, n_T)

    loss, aux = ddpm_forward(x, t, cond, eps, params, sched)
    jax.block_until_ready(loss)

    ref_loss, ref_bw = ddpm_forward_ref(x, t, cond, eps, params, sched)
    np.testing.assert_allclose(np.asarray(loss), np.asarray(ref_loss),
                               rtol=1e-5, atol=1e-5)
    np.testing.assert_allclose(np.asarray(aux["batchwise_loss"]),
                               np.asarray(ref_bw), rtol=1e-5, atol=1e-5)
    print("KERNEL_OK")
</pallas_src>

<mosaic_0001>
module attributes {stable_mosaic.version = 11 : i64} {
  func.func @_ddpm_kernel(%arg0: memref<8x256xf32, #tpu.memory_space<vmem>>, %arg1: memref<8x256xf32, #tpu.memory_space<vmem>>, %arg2: memref<72x128xf32, #tpu.memory_space<vmem>>, %arg3: memref<2x1x128xf32, #tpu.memory_space<vmem>>) attributes {dimension_semantics = [], scalar_prefetch = 0 : i64, scratch_operands = 0 : i64, tpu.core_type = #tpu.core_type<tc>} {
    %c0 = arith.constant 0 : index
    %c0_0 = arith.constant 0 : index
    %0 = vector.load %arg0[%c0, %c0_0] : memref<8x256xf32, #tpu.memory_space<vmem>>, vector<8x256xf32>
    %c0_1 = arith.constant 0 : index
    %c0_2 = arith.constant 0 : index
    %1 = vector.load %arg1[%c0_1, %c0_2] : memref<8x256xf32, #tpu.memory_space<vmem>>, vector<8x256xf32>
    %c0_3 = arith.constant 0 : index
    %c125 = arith.constant 125 : index
    %2 = vector.load %arg2[%c0_3, %c125] : memref<72x128xf32, #tpu.memory_space<vmem>>, vector<8x1xf32>
    %c0_4 = arith.constant 0 : index
    %c126 = arith.constant 126 : index
    %3 = vector.load %arg2[%c0_4, %c126] : memref<72x128xf32, #tpu.memory_space<vmem>>, vector<8x1xf32>
    %4 = vector.broadcast %2 : vector<8x1xf32> to vector<8x256xf32>
    %5 = arith.mulf %4, %0 : vector<8x256xf32>
    %6 = vector.broadcast %3 : vector<8x1xf32> to vector<8x256xf32>
    %7 = arith.mulf %6, %1 : vector<8x256xf32>
    %8 = arith.addf %5, %7 : vector<8x256xf32>
    %c0_5 = arith.constant 0 : index
    %c0_6 = arith.constant 0 : index
    %9 = vector.load %arg2[%c0_5, %c0_6] : memref<72x128xf32, #tpu.memory_space<vmem>>, vector<64x8xf32>
    %c0_7 = arith.constant 0 : index
    %c124 = arith.constant 124 : index
    %10 = vector.load %arg2[%c0_7, %c124] : memref<72x128xf32, #tpu.memory_space<vmem>>, vector<64x1xf32>
    %cst = arith.constant dense<0.000000e+00> : vector<64x256xf32>
    %11 = tpu.matmul %9, %8, %cst {dimension_numbers = #tpu.dot_dimension_numbers<[1], [0], [0], [1], [0, 0, 1, 1], [], []>} : vector<64x8xf32>, vector<8x256xf32>, vector<64x256xf32> -> vector<64x256xf32>
    %12 = vector.broadcast %10 : vector<64x1xf32> to vector<64x256xf32>
    %13 = arith.addf %11, %12 : vector<64x256xf32>
    %cst_8 = arith.constant 0.000000e+00 : f32
    %14 = vector.broadcast %cst_8 : f32 to vector<64x256xf32>
    %15 = arith.maximumf %13, %14 : vector<64x256xf32>
    %c64 = arith.constant 64 : index
    %c0_9 = arith.constant 0 : index
    %16 = vector.load %arg2[%c64, %c0_9] : memref<72x128xf32, #tpu.memory_space<vmem>>, vector<8x64xf32>
    %c0_10 = arith.constant 0 : index
    %c127 = arith.constant 127 : index
    %17 = vector.load %arg2[%c0_10, %c127] : memref<72x128xf32, #tpu.memory_space<vmem>>, vector<8x1xf32>
    %cst_11 = arith.constant dense<0.000000e+00> : vector<8x256xf32>
    %18 = tpu.matmul %16, %15, %cst_11 {dimension_numbers = #tpu.dot_dimension_numbers<[1], [0], [0], [1], [0, 0, 1, 1], [], []>} : vector<8x64xf32>, vector<64x256xf32>, vector<8x256xf32> -> vector<8x256xf32>
    %19 = vector.broadcast %17 : vector<8x1xf32> to vector<8x256xf32>
    %20 = arith.addf %18, %19 : vector<8x256xf32>
    %21 = arith.subf %1, %20 : vector<8x256xf32>
    %22 = arith.mulf %21, %21 : vector<8x256xf32>
    %23 = vector.shape_cast %22 : vector<8x256xf32> to vector<2x4x256xf32>
    %cst_12 = arith.constant dense<0.000000e+00> : vector<2x4xf32>
    %24 = vector.multi_reduction <add>, %23, %cst_12 [2] : vector<2x4x256xf32> to vector<2x4xf32>
    %25 = vector.shape_cast %24 : vector<2x4xf32> to vector<2x4x1xf32>
    %cst_13 = arith.constant dense<0.000000e+00> : vector<2x1xf32>
    %26 = vector.multi_reduction <add>, %25, %cst_13 [1] : vector<2x4x1xf32> to vector<2x1xf32>
    %27 = vector.shape_cast %26 : vector<2x1xf32> to vector<2x1x1xf32>
    %cst_14 = arith.constant 9.765625E-4 : f32
    %28 = vector.broadcast %cst_14 : f32 to vector<2x1x1xf32>
    %29 = arith.mulf %27, %28 : vector<2x1x1xf32>
    %30 = vector.shape_cast %29 : vector<2x1x1xf32> to vector<2x1x1xf32>
    %31 = vector.broadcast %30 : vector<2x1x1xf32> to vector<2x1x128xf32>
    %c0_15 = arith.constant 0 : index
    %c0_16 = arith.constant 0 : index
    %c0_17 = arith.constant 0 : index
    %32 = vector.load %arg3[%c0_15, %c0_16, %c0_17] : memref<2x1x128xf32, #tpu.memory_space<vmem>>, vector<2x1x128xf32>
    tpu.vector_store %arg3[%c0_15, %c0_16, %c0_17], %31 {strides = array<i32>} : memref<2x1x128xf32, #tpu.memory_space<vmem>>, vector<2x1x128xf32>,
    return
  }
}

</mosaic_0001>

<bundles_post_ra>
// kernel: tpu_custom_call.1
= control target key start
LH: loop header
LB: loop body
LE: loop exit
PB: predicated region body
PF: predicated region fallthrough
CT: control target
= control target key end

     0   :  { %8 = vsyncpa [#allocation3], 0  ;;  %s649_s0 = inlined_call_operand.hbm [shape: f32[8,256], index: 0, kind: input, shape index: {}]   ;;  %s650_s1 = inlined_call_operand.hbm [shape: f32[8,256], index: 1, kind: input, shape index: {}]   ;;  %s651_s2 = inlined_call_operand.hbm [shape: f32[72,128], index: 2, kind: input, shape index: {}]   ;;  %s652_s3 = inlined_call_operand.hbm [shape: f32[2,1,128], index: 3, kind: output, shape index: {}]  }
   0x1   :  { %9 = vsyncpa [#allocation6], 0 }
   0x2   :  { %10 = vsyncpa [#allocation4], 0  ;;  %s546_s12 = smov [#allocation5]   ;;  %s547_s14 = smov [#allocation2]  }
   0x3   :  { %s27_s13 = sshll.u32 %s546_s12, 4  ;;  %s17_s15 = sshll.u32 %s547_s14, 4  ;;  %s28_s13 = int_to_ptr.vmem [resolvable:$true] %s27_s13  ;;  %s18_s15 = int_to_ptr.vmem [resolvable:$true] %s17_s15 }
   0x4   :  { %s452_s18 = scalar_lea.hbm %s650_s1, 256 }
   0x5   :  { %p453_p0 = scmp.ne.s32.totalorder %s650_s1, %s452_s18  ;;  %p456_p1 = scmp.lt.u32.totalorder %s452_s18, %s650_s1 }
   0x7   :  { %p458_p2 = pnand %p456_p1, %p453_p0 }
   0x9   :  { %461 = shalt.err (!%p458_p2)
}
   0xa   :  { %s462_s23 = scalar_lea.vmem %s28_s13, 256  ;;  %p467_p4 = scmp.lt.s32.totalorder %s28_s13, %s28_s13 }
   0xb   :  { %p463_p3 = scmp.ne.s32.totalorder %s28_s13, %s462_s23  ;;  %p468_p5 = scmp.lt.s32.totalorder %s462_s23, %s462_s23 }
   0xd   :  { %p469_p6 = por %p468_p5, %p467_p4 }
   0xf   :  { %p470_p7 = pnand %p469_p6, %p463_p3 }
  0x11   :  { %473 = shalt.err (!%p470_p7)
}
  0x12   :  { %30 = dma.hbm_to_vmem [thread:$0]  %s650_s1, 256, %s28_s13, [#allocation6]  }
  0x13   :  { %s474_s28 = scalar_lea.hbm %s649_s0, 256 }
  0x14   :  { %p475_p8 = scmp.ne.s32.totalorder %s649_s0, %s474_s28  ;;  %p478_p9 = scmp.lt.u32.totalorder %s474_s28, %s649_s0 }
  0x16   :  { %p480_p10 = pnand %p478_p9, %p475_p8 }
  0x18   :  { %483 = shalt.err (!%p480_p10)
}
  0x19   :  { %s484_s6 = scalar_lea.vmem %s18_s15, 256  ;;  %p489_p12 = scmp.lt.s32.totalorder %s18_s15, %s18_s15 }
  0x1a   :  { %p485_p11 = scmp.ne.s32.totalorder %s18_s15, %s484_s6  ;;  %p490_p13 = scmp.lt.s32.totalorder %s484_s6, %s484_s6 }
  0x1c   :  { %p491_p0 = por %p490_p13, %p489_p12 }
  0x1e   :  { %p492_p1 = pnand %p491_p0, %p485_p11 }
  0x20   :  { %495 = shalt.err (!%p492_p1)
}
  0x21   :  { %20 = dma.hbm_to_vmem [thread:$0]  %s649_s0, 256, %s18_s15, [#allocation3]  }
  0x22   :  { %s548_s8 = smov [#allocation7]   ;;  %s496_s12 = scalar_lea.hbm %s651_s2, 1152 }
  0x23   :  { %s36_s9 = sshll.u32 %s548_s8, 4  ;;  %p497_p2 = scmp.ne.s32.totalorder %s651_s2, %s496_s12  ;;  %s37_s9 = int_to_ptr.vmem [resolvable:$true] %s36_s9 }
  0x24   :  { %p500_p3 = scmp.lt.u32.totalorder %s496_s12, %s651_s2 }
  0x26   :  { %p502_p4 = pnand %p500_p3, %p497_p2 }
  0x28   :  { %505 = shalt.err (!%p502_p4)
}
  0x29   :  { %s506_s18 = scalar_lea.vmem %s37_s9, 1152  ;;  %p511_p6 = scmp.lt.s32.totalorder %s37_s9, %s37_s9 }
  0x2a   :  { %p507_p5 = scmp.ne.s32.totalorder %s37_s9, %s506_s18  ;;  %p512_p7 = scmp.lt.s32.totalorder %s506_s18, %s506_s18 }
  0x2c   :  { %p513_p8 = por %p512_p7, %p511_p6 }
  0x2e   :  { %p514_p9 = pnand %p513_p8, %p507_p5 }
  0x30   :  { %517 = shalt.err (!%p514_p9)
}
  0x31   :  { %s549_s0 = smov 128   ;;  %s550_s15 = smov 8  }
  0x32   :  { %42 = dma.hbm_to_vmem [thread:$0]  %s651_s2, 1152, %s37_s9, [#allocation6], %s549_s0, %s549_s0, %s550_s15  }
  0x33   :  { %540 = dma.done.wait [#allocation3], 256  }
  0x34   :  { %541 = vsyncadd [#allocation3], 4294967040 }
  0x35   :  { %542 = dma.done.wait [#allocation6], 1408  }
  0x36   :  { %543 = vsyncadd [#allocation6], 4294965888  ;;  %v551_v0 = vmov 125   ;;  %v56_v1 = vld [vmem:[#allocation7] sm:$0xff]  ;;  %v552_v2 = vmov 126   ;;  %v553_v3 = vmov 0.0  }
  0x37   :  { %447 = vset.pattern.permute.xlu0 %v551_v0  ;;  %201 = vmatprep.mubr.f32.mxu0 %v553_v3  ;;  %v75_v4 = vld [vmem:[#allocation7 + $0x18] sm:$0xff]  ;;  %v554_v5 = vmov 124   ;;  %v73_v6 = vld [vmem:[#allocation7 + $0x8] sm:$0xff]  ;;  %v78_v7 = vld [vmem:[#allocation7 + $0x30] sm:$0xff]  ;;  %vm120_vm0 = vcmask 64512   ;;  %v555_v24 = vmov 127  }
  0x38   :  { %59 = vperm.xlu0 %447, %v56_v1   ;;  %339 = vmatprep.mubr.f32.mxu1 %v553_v3  ;;  %v74_v8 = vld [vmem:[#allocation7 + $0x10] sm:$0xff]  ;;  %v76_v9 = vld [vmem:[#allocation7 + $0x20] sm:$0xff]  ;;  %v77_v10 = vld [vmem:[#allocation7 + $0x28] sm:$0xff]  ;;  %vm271_vm1 = vcmask 523264   ;;  %vm360_vm2 = vcmask 1043456   ;;  %s556_s2 = smov [#allocation8]  }
  0x39   :  { %449 = vset.pattern.permute.xlu1 %v554_v5  ;;  %v79_v11 = vld [vmem:[#allocation7 + $0x38] sm:$0xff]  ;;  %v52_v13 = vld [vmem:[#allocation2] sm:$0xff]  ;;  %v53_v14 = vld [vmem:[#allocation2 + $0x8] sm:$0xff]  ;;  %s394_s21 = sshll.u32 %s556_s2, 4  ;;  %s395_s21 = int_to_ptr.vmem [resolvable:$true] %s394_s21 }
  0x3a   :  { %82 = vperm.xlu1 %449, %v56_v1   ;;  %v615_v15 = vld [vmem:[#allocation5] sm:$0xff]  ;;  %v617_v16 = vld [vmem:[#allocation5 + $0x8] sm:$0xff]  ;;  %s518_s22 = scalar_lea.vmem %s395_s21, 32  ;;  %p523_p11 = scmp.lt.s32.totalorder %s395_s21, %s395_s21 }
  0x3b   :  { %p519_p10 = scmp.ne.s32.totalorder %s395_s21, %s518_s22  ;;  %p524_p12 = scmp.lt.s32.totalorder %s518_s22, %s518_s22 }
  0x3c   :  { %448 = vset.pattern.permute.xlu0 %v552_v2 }
  0x3d   :  { %65 = vperm.xlu0 %448, %v56_v1   ;;  %p525_p13 = por %p524_p12, %p523_p11 }
  0x3e   :  { %87 = vperm.xlu1 %449, %v73_v6  }
  0x3f   :  { %p526_p0 = pnand %p525_p13, %p519_p10 }
  0x41   :  { %450 = vset.pattern.permute.xlu0 %v554_v5 }
  0x42   :  { %97 = vperm.xlu0 %450, %v75_v4   ;;  %92 = vperm.xlu1 %449, %v74_v8  }
  0x46   :  { %112 = vperm.xlu0 %450, %v78_v7   ;;  %102 = vperm.xlu1 %449, %v76_v9  }
  0x4a   :  { %107 = vperm.xlu1 %449, %v77_v10   ;;  %451 = vset.pattern.permute.xlu0 %v555_v24 }
  0x4b   :  { %268 = vperm.xlu0 %451, %v56_v1  }
  0x4e   :  { %117 = vperm.xlu1 %449, %v79_v11  }
  0xb7   :  { %v60_v12 = vpop.permute.xlu0 %59 }
  0xb8   :  { %v62_v18 = vmul.f32 %v60_v12, %v52_v13  ;;  %v63_v19 = vmul.f32 %v60_v12, %v53_v14 }
  0xb9   :  { %v83_v25 = vpop.permute.xlu1 %82 }
  0xbc   :  { %v66_v17 = vpop.permute.xlu0 %65 }
  0xbd   :  { %v68_v20 = vmul.f32 %v66_v17, %v615_v15  ;;  %v69_v21 = vmul.f32 %v66_v17, %v617_v16  ;;  %v88_v28 = vpop.permute.xlu1 %87 }
  0xbf   :  { %v71_v22 = vadd.f32 %v69_v21, %v63_v19  ;;  %v70_v23 = vadd.f32 %v68_v20, %v62_v18 }
  0xc1   :  { %137 = vmatprep.subr.mxu0 %v71_v22  ;;  %v93_v37 = vpop.permute.xlu1 %92  ;;  %v98_v43 = vpop.permute.xlu0 %97 }
  0xc2   :  { %138 = vmatpush1.msra.mxu0 %v70_v23 }
  0xc3   :  { %407 = vmatmul.mubr.msk.f32.vlgmr.msra.gmra.mrb[0].mxu0 %vm120_vm0, %v56_v1 }
  0xc4   :  { %207 = vmatprep.mubr.f32.mxu0 %v553_v3 }
  0xc5   :  { %v103_v50 = vpop.permute.xlu1 %102 }
  0xc7   :  { %408 = vmatmul.mubr.msk.f32.gmra.mrb[2].mxu0 %vm120_vm0, %v73_v6 }
  0xc8   :  { %213 = vmatprep.mubr.f32.mxu0 %v553_v3 }
  0xc9   :  { %v108_v61 = vpop.permute.xlu1 %107 }
  0xcb   :  { %409 = vmatmul.mubr.msk.f32.gmra.mrb[4].mxu0 %vm120_vm0, %v74_v8 }
  0xcc   :  { %219 = vmatprep.mubr.f32.mxu0 %v553_v3 }
  0xcd   :  { %v118_v13 = vpop.permute.xlu1 %117 }
  0xcf   :  { %410 = vmatmul.mubr.msk.f32.gmra.mrb[6].mxu0 %vm120_vm0, %v75_v4 }
  0xd0   :  { %225 = vmatprep.mubr.f32.mxu0 %v553_v3 }
  0xd3   :  { %411 = vmatmul.mubr.msk.f32.gmra.mrb[8].mxu0 %vm120_vm0, %v76_v9 }
  0xd4   :  { %231 = vmatprep.mubr.f32.mxu0 %v553_v3 }
  0xd7   :  { %412 = vmatmul.mubr.msk.f32.gmra.mrb[10].mxu0 %vm120_vm0, %v77_v10  ;;  %v113_v10 = vpop.permute.xlu0 %112 }
  0xd8   :  { %237 = vmatprep.mubr.f32.mxu0 %v553_v3 }
  0xdb   :  { %413 = vmatmul.mubr.msk.f32.gmra.mrb[12].mxu0 %vm120_vm0, %v78_v7 }
  0xdc   :  { %243 = vmatprep.mubr.f32.mxu0 %v553_v3 }
  0xdf   :  { %414 = vmatmul.mubr.msk.f32.gmra.mrb[14].mxu0 %vm120_vm0, %v79_v11 }
 0x196   :  { %v203_v26 = vpop.f32.mrb[0].mxu0 }
 0x197   :  { %v205_v27 = vpop.f32.mrb[1].mxu0  ;;  %v204_v29 = vadd.f32 %v203_v26, %v83_v25 }
 0x198   :  { %v206_v30 = vadd.f32 %v205_v27, %v83_v25  ;;  %v266_v27 = vld [vmem:[#allocation7 + $0x40] sm:$0xff] }
 0x199   :  { %v250_v35 = vmax.f32 %v204_v29, 0.0 }
 0x19a   :  { %v209_v31 = vpop.f32.mrb[2].mxu0  ;;  %v251_v38 = vmax.f32 %v206_v30, 0.0 }
 0x19b   :  { %v210_v32 = vadd.f32 %v209_v31, %v88_v28  ;;  %v211_v33 = vpop.f32.mrb[3].mxu0 }
 0x19c   :  { %v212_v34 = vadd.f32 %v211_v33, %v88_v28  ;;  %v269_v28 = vpop.permute.xlu0 %268 }
 0x19d   :  { %v252_v36 = vmax.f32 %v210_v32, 0.0 }
 0x19e   :  { %v253_v39 = vmax.f32 %v212_v34, 0.0  ;;  %v215_v40 = vpop.f32.mrb[4].mxu0 }
 0x19f   :  { %v217_v41 = vpop.f32.mrb[5].mxu0  ;;  %v420_v42 = vpack.c.bf16 %v252_v36, %v250_v35  ;;  %v216_v45 = vadd.f32 %v215_v40, %v93_v37 }
 0x1a0   :  { %v418_v44 = vpack.c.bf16 %v253_v39, %v251_v38  ;;  %v218_v46 = vadd.f32 %v217_v41, %v93_v37 }
 0x1a1   :  { %v254_v52 = vmax.f32 %v216_v45, 0.0 }
 0x1a2   :  { %v221_v47 = vpop.f32.mrb[6].mxu0  ;;  %419 = vmatprep.subr.bf16.mxu1 %v418_v44  ;;  %v255_v54 = vmax.f32 %v218_v46, 0.0 }
 0x1a3   :  { %v222_v48 = vadd.f32 %v221_v47, %v98_v43  ;;  %v223_v49 = vpop.f32.mrb[7].mxu0  ;;  %421 = vmatpush1.bf16.msra.mxu1 %v420_v42 }
 0x1a4   :  { %v224_v51 = vadd.f32 %v223_v49, %v98_v43 }
 0x1a5   :  { %v256_v53 = vmax.f32 %v222_v48, 0.0 }
 0x1a6   :  { %v257_v55 = vmax.f32 %v224_v51, 0.0  ;;  %v227_v56 = vpop.f32.mrb[8].mxu0 }
 0x1a7   :  { %v424_v57 = vpack.c.bf16 %v256_v53, %v254_v52  ;;  %v229_v58 = vpop.f32.mrb[9].mxu0  ;;  %v228_v60 = vadd.f32 %v227_v56, %v103_v50 }
 0x1a8   :  { %v422_v59 = vpack.c.bf16 %v257_v55, %v255_v54  ;;  %v230_v62 = vadd.f32 %v229_v58, %v103_v50 }
 0x1a9   :  { %v258_v3 = vmax.f32 %v228_v60, 0.0 }
 0x1aa   :  { %v233_v63 = vpop.f32.mrb[10].mxu0  ;;  %423 = vmatprep.subr.bf16.mxu1 %v422_v59  ;;  %v259_v5 = vmax.f32 %v230_v62, 0.0 }
 0x1ab   :  { %v234_v0 = vadd.f32 %v233_v63, %v108_v61  ;;  %v235_v1 = vpop.f32.mrb[11].mxu0  ;;  %425 = vmatpush1.bf16.msra.mxu1 %v424_v57 }
 0x1ac   :  { %v236_v2 = vadd.f32 %v235_v1, %v108_v61 }
 0x1ad   :  { %v260_v4 = vmax.f32 %v234_v0, 0.0 }
 0x1ae   :  { %v261_v6 = vmax.f32 %v236_v2, 0.0  ;;  %v239_v7 = vpop.f32.mrb[12].mxu0 }
 0x1af   :  { %v428_v8 = vpack.c.bf16 %v260_v4, %v258_v3  ;;  %v241_v9 = vpop.f32.mrb[13].mxu0  ;;  %v240_v12 = vadd.f32 %v239_v7, %v113_v10 }
 0x1b0   :  { %v426_v11 = vpack.c.bf16 %v261_v6, %v259_v5  ;;  %v242_v14 = vadd.f32 %v241_v9, %v113_v10 }
 0x1b1   :  { %v262_v21 = vmax.f32 %v240_v12, 0.0 }
 0x1b2   :  { %v245_v17 = vpop.f32.mrb[14].mxu0  ;;  %427 = vmatprep.subr.bf16.mxu1 %v426_v11  ;;  %v263_v23 = vmax.f32 %v242_v14, 0.0 }
 0x1b3   :  { %v246_v18 = vadd.f32 %v245_v17, %v118_v13  ;;  %v247_v19 = vpop.f32.mrb[15].mxu0  ;;  %429 = vmatpush1.bf16.msra.mxu1 %v428_v8 }
 0x1b4   :  { %v248_v20 = vadd.f32 %v247_v19, %v118_v13 }
 0x1b5   :  { %v264_v22 = vmax.f32 %v246_v18, 0.0 }
 0x1b6   :  { %v265_v24 = vmax.f32 %v248_v20, 0.0 }
 0x1b7   :  { %v432_v25 = vpack.c.bf16 %v264_v22, %v262_v21 }
 0x1b8   :  { %v430_v26 = vpack.c.bf16 %v265_v24, %v263_v23 }
 0x1ba   :  { %431 = vmatprep.subr.bf16.mxu1 %v430_v26 }
 0x1bb   :  { %433 = vmatpush1.bf16.msra.mxu1 %v432_v25 }
 0x1be   :  { %415 = vmatmul.mubr.msk.f32.vlgmr.msra.gmra.mrb[0].mxu1 %vm271_vm1, %v266_v27 }
 0x291   :  { %v341_v29 = vpop.f32.mrb[0].mxu1 }
 0x292   :  { %v342_v30 = vadd.f32 %v341_v29, %v269_v28  ;;  %v343_v31 = vpop.f32.mrb[1].mxu1 }
 0x293   :  { %v344_v32 = vadd.f32 %v343_v31, %v269_v28 }
 0x294   :  { %v346_v33 = vsub.f32 %v615_v15, %v342_v30 }
 0x295   :  { %v347_v34 = vsub.f32 %v617_v16, %v344_v32 }
 0x296   :  { %v348_v35 = vmul.f32 %v346_v33, %v346_v33 }
 0x297   :  { %v349_v36 = vmul.f32 %v347_v34, %v347_v34 }
 0x299   :  { %v353_v37 = vcombine.high %v348_v35, %v349_v36  ;;  %v417_v38 = vcombine.high %v349_v36, %v349_v36  ;;  %v352_v39 = vcombine.low %v348_v35, %v349_v36  ;;  %v416_v40 = vcombine.low %v349_v36, %v349_v36 }
 0x29b   :  { %v366_v41 = vsel %vm360_vm2, %v353_v37, 0.0  ;;  %v367_v42 = vsel %vm360_vm2, %v417_v38, 0.0  ;;  %v361_v43 = vsel %vm360_vm2, %v352_v39, 0.0  ;;  %v362_v44 = vsel %vm360_vm2, %v416_v40, 0.0 }
 0x29c   :  { %v368_v45 = vadd.f32 %v367_v42, %v366_v41  ;;  %v363_v46 = vadd.f32 %v362_v44, %v361_v43 }
 0x29e   :  { %369 = vadd.xlane.f32.xlu0 %v368_v45  ;;  %364 = vadd.xlane.f32.xlu1 %v363_v46 }
 0x32b   :  { %v370_v15 = vpop.xlane.xlu0 %369  ;;  %v365_v16 = vpop.xlane.xlu1 %364 }
 0x32c   :  { %v378_v47 = vsel %vm360_vm2, %v370_v15, 0.0  ;;  %v371_v48 = vsel %vm360_vm2, %v365_v16, 0.0 }
 0x32d   :  { %v379_v49 = vrot.slane %v378_v47, 4  ;;  %v372_v50 = vrot.slane %v371_v48, 4 }
 0x32f   :  { %v380_v51 = vadd.f32 %v379_v49, %v378_v47  ;;  %v373_v52 = vadd.f32 %v372_v50, %v371_v48 }
 0x331   :  { %v381_v53 = vrot.slane %v380_v51, 2  ;;  %v374_v54 = vrot.slane %v373_v52, 2 }
 0x333   :  { %v382_v55 = vadd.f32 %v381_v53, %v380_v51  ;;  %v375_v56 = vadd.f32 %v374_v54, %v373_v52 }
 0x335   :  { %v383_v57 = vrot.slane %v382_v55, 1  ;;  %v376_v58 = vrot.slane %v375_v56, 1 }
 0x337   :  { %v384_v59 = vadd.f32 %v383_v57, %v382_v55  ;;  %v377_v60 = vadd.f32 %v376_v58, %v375_v56 }
 0x339   :  { %v386_v61 = vmul.f32 0.0009765625, %v384_v59  ;;  %v385_v62 = vmul.f32 0.0009765625, %v377_v60 }
 0x33b   :  { %388 = vst [vmem:[#allocation8 + $0x1] sm:$0x1] %v386_v61  ;;  %387 = vst [vmem:[#allocation8] sm:$0x1] %v385_v62 }
 0x33c   :  { %529 = shalt.err (!%p526_p0)
}
 0x33d   :  { %s530_s25 = scalar_lea.hbm %s652_s3, 32 }
 0x33e   :  { %p531_p1 = scmp.ne.s32.totalorder %s652_s3, %s530_s25  ;;  %p534_p2 = scmp.lt.u32.totalorder %s530_s25, %s652_s3 }
 0x340   :  { %p536_p3 = pnand %p534_p2, %p531_p1 }
 0x342   :  { %539 = shalt.err (!%p536_p3)
}
 0x343   :  { %s557_s30 = smov 16   ;;  %s558_s4 = smov 1  }
 0x344   :  { %400 = dma.vmem_to_hbm [thread:$0]  %s395_s21, 32, %s652_s3, [#allocation4], %s557_s30, %s557_s30, %s558_s4  }
 0x345   :  { %544 = dma.done.wait [#allocation4], 32  }
 0x346   :  { %545 = vsyncadd [#allocation4], 4294967264 }
 0x347   :  { %404 = vsyncpa [#allocation3], 1 }
 0x348   :  { %405 = vsyncpa [#allocation6], 1 }
 0x349   :  { %406 = vsyncpa [#allocation4], 1 }

</bundles_post_ra>
